<compile_context>
chip_gen: v7x
topology: tpu7x:2x2x1
jax: 0.10.0
libtpu: 0.0.40
codegen_flags: <defaults>
</compile_context>

<pallas_src>
import functools

import jax
import jax.numpy as jnp
from jax.experimental import pallas as pl
from jax.experimental.pallas import tpu as pltpu


def _mse_partial_kernel(o_ref, t_ref, psum_ref, *, TR, TC, B, L,
                        mask_rows, mask_cols):
    # One (TR, TC) tile: sum of squared differences for this block, written to
    # this block's own SMEM slot (no cross-step read-modify-write chain).
    d = o_ref[...].astype(jnp.float32) - t_ref[...].astype(jnp.float32)
    sq = d * d
    # Edge blocks may read undefined values past the true (B, L) extent when
    # the tile does not divide the shape; select them to 0 before reducing.
    if mask_rows or mask_cols:
        valid = None
        if mask_rows:
            row = (jax.lax.broadcasted_iota(jnp.int32, (TR, TC), 0)
                   + pl.program_id(0) * TR)
            valid = row < B
        if mask_cols:
            col = (jax.lax.broadcasted_iota(jnp.int32, (TR, TC), 1)
                   + pl.program_id(1) * TC)
            cmask = col < L
            valid = cmask if valid is None else jnp.logical_and(valid, cmask)
        sq = jnp.where(valid, sq, jnp.float32(0.0))
    psum_ref[0, 0] = jnp.sum(sq)


def _round_up(x, m):
    return ((x + m - 1) // m) * m


def _choose_tile(B, L, itemsize, target_bytes=2 * 1024 * 1024):
    """Pick a ~target_bytes per-input tile; lane dim multiple of 128, row dim
    a multiple of the dtype's sublane packing granularity."""
    tc = min(_round_up(L, 128), 2048)
    row_g = max(8, 32 // max(1, itemsize))  # 8 f32, 16 bf16, 32 int8/fp8
    tr = max(row_g, (target_bytes // (tc * itemsize)) // row_g * row_g)
    tr = min(tr, _round_up(B, row_g))
    return tr, tc


def torch_mse_loss(output, target):
    """Mean squared error (nn.MSELoss(), 'mean') computed in a Pallas TPU kernel."""
    assert output.shape == target.shape, "MSELoss requires matching shapes"
    orig_dtype = output.dtype

    # Work on a 2-D view; the 'mean' reduction is over every element anyway.
    if output.ndim == 0:
        output, target = output.reshape(1, 1), target.reshape(1, 1)
    elif output.ndim == 1:
        output, target = output[None, :], target[None, :]
    elif output.ndim > 2:
        output = output.reshape(output.shape[0], -1)
        target = target.reshape(target.shape[0], -1)

    B, L = output.shape
    n_total = B * L
    itemsize = jnp.dtype(output.dtype).itemsize

    TR, TC = _choose_tile(B, L, itemsize)
    nR = (B + TR - 1) // TR
    nC = (L + TC - 1) // TC
    mask_rows = (B % TR) != 0
    mask_cols = (L % TC) != 0

    kernel = functools.partial(
        _mse_partial_kernel, TR=TR, TC=TC, B=B, L=L,
        mask_rows=mask_rows, mask_cols=mask_cols)

    cost = pl.CostEstimate(
        flops=3 * n_total,                                  # sub, mul, add
        transcendentals=0,
        bytes_accessed=2 * n_total * itemsize + nR * nC * 4,
    )

    partials = pl.pallas_call(
        kernel,
        out_shape=jax.ShapeDtypeStruct((nR, nC), jnp.float32),
        grid_spec=pltpu.PrefetchScalarGridSpec(
            num_scalar_prefetch=0,
            grid=(nR, nC),
            in_specs=[
                pl.BlockSpec((TR, TC), lambda i, j: (i, j)),
                pl.BlockSpec((TR, TC), lambda i, j: (i, j)),
            ],
            out_specs=pl.BlockSpec(
                (1, 1), lambda i, j: (i, j), memory_space=pltpu.SMEM
            ),
        ),
        compiler_params=pltpu.CompilerParams(
            # Independent per-block partial sums -> fully parallel grid
            # (shards across TensorCores on multi-TC chips).
            dimension_semantics=("parallel", "parallel"),
            # Headroom for double-buffered ~2 MiB input tiles (v5e scoped
            # default is only 16 MiB); well under v7x's 64 MiB physical VMEM.
            vmem_limit_bytes=32 * 1024 * 1024,
        ),
        cost_estimate=cost,
    )(output, target)

    # Tiny epilogue: tree-sum the per-block partials and apply the mean.
    loss = jnp.sum(partials) * jnp.float32(1.0 / n_total)
    if jnp.issubdtype(orig_dtype, jnp.floating):
        loss = loss.astype(orig_dtype)
    return loss


if __name__ == "__main__":
    key = jax.random.PRNGKey(0)
    k_out, k_tgt = jax.random.split(key)

    # Small shapes consistent with the module: (B, L) predictions / targets.
    B, L = 16, 256
    output = jax.random.normal(k_out, (B, L), dtype=jnp.float32)
    target = jax.random.normal(k_tgt, (B, L), dtype=jnp.float32)

    loss = jax.block_until_ready(torch_mse_loss(output, target))
    ref = jnp.mean((output - target) ** 2)
    assert jnp.allclose(loss, ref, rtol=1e-5, atol=1e-6), (loss, ref)

    # Non-tile-aligned shape: exercises the in-kernel edge-masking path
    # (no host-side padding copy).
    B2, L2 = 13, 200
    o2 = jax.random.normal(k_out, (B2, L2), dtype=jnp.float32)
    t2 = jax.random.normal(k_tgt, (B2, L2), dtype=jnp.float32)
    loss2 = jax.block_until_ready(torch_mse_loss(o2, t2))
    ref2 = jnp.mean((o2 - t2) ** 2)
    assert jnp.allclose(loss2, ref2, rtol=1e-5, atol=1e-6), (loss2, ref2)

    # Higher-rank input: exercises the reshape-to-2D path.
    o3 = jax.random.normal(k_out, (2, 4, 16), dtype=jnp.float32)
    t3 = jax.random.normal(k_tgt, (2, 4, 16), dtype=jnp.float32)
    loss3 = jax.block_until_ready(torch_mse_loss(o3, t3))
    ref3 = jnp.mean((o3 - t3) ** 2)
    assert jnp.allclose(loss3, ref3, rtol=1e-5, atol=1e-6), (loss3, ref3)

    print("KERNEL_OK")
</pallas_src>

<mosaic_0001>
module attributes {stable_mosaic.version = 11 : i64} {
  func.func @_mse_partial_kernel(%arg0: i32, %arg1: i32, %arg2: memref<16x256xf32, #tpu.memory_space<vmem>>, %arg3: memref<16x256xf32, #tpu.memory_space<vmem>>, %arg4: memref<1x1xf32, #tpu.memory_space<smem>>) attributes {dimension_semantics = [#tpu.dimension_semantics<parallel>, #tpu.dimension_semantics<parallel>], iteration_bounds = array<i64: 1, 1>, scalar_prefetch = 0 : i64, scratch_operands = 0 : i64, tpu.core_type = #tpu.core_type<tc>, window_params = [{transform_indices = @transform_0, window_bounds = array<i64: 16, 256>}, {transform_indices = @transform_1, window_bounds = array<i64: 16, 256>}, {transform_indices = @transform_2, window_bounds = array<i64: 1, 1>}]} {
    %c0 = arith.constant 0 : index
    %c0_0 = arith.constant 0 : index
    %0 = vector.load %arg2[%c0, %c0_0] : memref<16x256xf32, #tpu.memory_space<vmem>>, vector<16x256xf32>
    %c0_1 = arith.constant 0 : index
    %c0_2 = arith.constant 0 : index
    %1 = vector.load %arg3[%c0_1, %c0_2] : memref<16x256xf32, #tpu.memory_space<vmem>>, vector<16x256xf32>
    %2 = arith.subf %0, %1 : vector<16x256xf32>
    %3 = arith.mulf %2, %2 : vector<16x256xf32>
    %4 = vector.shape_cast %3 : vector<16x256xf32> to vector<1x16x256xf32>
    %cst = arith.constant dense<0.000000e+00> : vector<1xf32>
    %5 = vector.multi_reduction <add>, %4, %cst [1, 2] : vector<1x16x256xf32> to vector<1xf32>
    %6 = vector.shape_cast %5 : vector<1xf32> to vector<1x1x1xf32>
    %7 = vector.extract %6[0, 0, 0] : f32 from vector<1x1x1xf32>
    %c0_3 = arith.constant 0 : index
    %c0_4 = arith.constant 0 : index
    %8 = memref.load %arg4[%c0_3, %c0_4] : memref<1x1xf32, #tpu.memory_space<smem>>
    memref.store %7, %arg4[%c0_3, %c0_4] : memref<1x1xf32, #tpu.memory_space<smem>>
    return
  }
  func.func @transform_0(%arg0: i32, %arg1: i32) -> (i32, i32) {
    %c0_i32 = arith.constant 0 : i32
    return %arg0, %arg1 : i32, i32
  }
  func.func @transform_1(%arg0: i32, %arg1: i32) -> (i32, i32) {
    %c0_i32 = arith.constant 0 : i32
    return %arg0, %arg1 : i32, i32
  }
  func.func @transform_2(%arg0: i32, %arg1: i32) -> (i32, i32) {
    %c0_i32 = arith.constant 0 : i32
    return %arg0, %arg1 : i32, i32
  }
}

</mosaic_0001>

<bundles_post_ra>
// kernel: tpu_custom_call.1
= control target key start
LH: loop header
LB: loop body
LE: loop exit
PB: predicated region body
PF: predicated region fallthrough
CT: control target
= control target key end

     0   :  { %7 = vsyncpa [#allocation3], 0  ;;  %s208_s0 = inlined_call_operand.hbm [shape: f32[16,256], index: 0, kind: input, shape index: {}]   ;;  %s209_s1 = inlined_call_operand.hbm [shape: f32[16,256], index: 1, kind: input, shape index: {}]   ;;  %s210_s2 = inlined_call_operand.hbm [shape: f32[1,1], index: 2, kind: output, shape index: {}]  }
   0x1   :  { %8 = vsyncpa [#allocation6], 0 }
   0x2   :  { %9 = vsyncpa [#allocation4], 0  ;;  %s152_s9 = smov [#allocation2]   ;;  %s92_s13 = scalar_lea.hbm %s208_s0, 512 }
   0x3   :  { %s15_s10 = sshll.u32 %s152_s9, 4  ;;  %p93_p0 = scmp.ne.s32.totalorder %s208_s0, %s92_s13  ;;  %s16_s10 = int_to_ptr.vmem [resolvable:$true] %s15_s10 }
   0x4   :  { %p96_p1 = scmp.lt.u32.totalorder %s92_s13, %s208_s0 }
   0x6   :  { %p98_p2 = pnand %p96_p1, %p93_p0 }
   0x8   :  { %101 = shalt.err (!%p98_p2)
}
   0x9   :  { %s102_s18 = scalar_lea.vmem %s16_s10, 512  ;;  %p107_p4 = scmp.lt.s32.totalorder %s16_s10, %s16_s10 }
   0xa   :  { %p103_p3 = scmp.ne.s32.totalorder %s16_s10, %s102_s18  ;;  %p108_p5 = scmp.lt.s32.totalorder %s102_s18, %s102_s18 }
   0xc   :  { %p109_p6 = por %p108_p5, %p107_p4 }
   0xe   :  { %p110_p7 = pnand %p109_p6, %p103_p3 }
  0x10   :  { %113 = shalt.err (!%p110_p7)
}
  0x11   :  { %s153_s19 = smov 256   ;;  %s154_s20 = smov 16  }
  0x12   :  { %21 = dma.hbm_to_vmem [thread:$0]  %s208_s0, 512, %s16_s10, [#allocation3], %s153_s19, %s153_s19, %s154_s20  }
  0x13   :  { %s155_s23 = smov [#allocation5]   ;;  %s114_s27 = scalar_lea.hbm %s209_s1, 512 }
  0x14   :  { %s27_s24 = sshll.u32 %s155_s23, 4  ;;  %p115_p8 = scmp.ne.s32.totalorder %s209_s1, %s114_s27  ;;  %s28_s24 = int_to_ptr.vmem [resolvable:$true] %s27_s24 }
  0x15   :  { %p118_p9 = scmp.lt.u32.totalorder %s114_s27, %s209_s1 }
  0x17   :  { %p120_p10 = pnand %p118_p9, %p115_p8 }
  0x19   :  { %123 = shalt.err (!%p120_p10)
}
  0x1a   :  { %s124_s4 = scalar_lea.vmem %s28_s24, 512  ;;  %p129_p12 = scmp.lt.s32.totalorder %s28_s24, %s28_s24 }
  0x1b   :  { %p125_p11 = scmp.ne.s32.totalorder %s28_s24, %s124_s4  ;;  %p130_p13 = scmp.lt.s32.totalorder %s124_s4, %s124_s4 }
  0x1d   :  { %p131_p0 = por %p130_p13, %p129_p12 }
  0x1f   :  { %p132_p1 = pnand %p131_p0, %p125_p11 }
  0x21   :  { %135 = shalt.err (!%p132_p1)
}
  0x22   :  { %33 = dma.hbm_to_vmem [thread:$0]  %s209_s1, 512, %s28_s24, [#allocation6], %s153_s19, %s153_s19, %s154_s20  }
  0x23   :  { %146 = dma.done.wait [#allocation3], 512  }
  0x24   :  { %147 = vsyncadd [#allocation3], 4294966784 }
  0x25   :  { %148 = dma.done.wait [#allocation6], 512  }
  0x26   :  { %149 = vsyncadd [#allocation6], 4294966784  ;;  %v40_v0 = vld [vmem:[#allocation2] sm:$0xff]  ;;  %v41_v1 = vld [vmem:[#allocation2 + $0x8] sm:$0xff]  ;;  %s136_s8 = scalar_lea.hbm %s210_s2, 16 }
  0x27   :  { %v42_v2 = vld [vmem:[#allocation2 + $0x10] sm:$0xff]  ;;  %v43_v3 = vld [vmem:[#allocation2 + $0x18] sm:$0xff]  ;;  %v44_v4 = vld [vmem:[#allocation5] sm:$0xff]  ;;  %p137_p2 = scmp.ne.s32.totalorder %s210_s2, %s136_s8  ;;  %p140_p3 = scmp.lt.u32.totalorder %s136_s8, %s210_s2 }
  0x28   :  { %v45_v5 = vld [vmem:[#allocation5 + $0x8] sm:$0xff]  ;;  %v46_v6 = vld [vmem:[#allocation5 + $0x10] sm:$0xff]  ;;  %v47_v7 = vld [vmem:[#allocation5 + $0x18] sm:$0xff]  ;;  %v48_v8 = vsub.f32 %v40_v0, %v44_v4 }
  0x29   :  { %v49_v9 = vsub.f32 %v41_v1, %v45_v5  ;;  %v50_v10 = vsub.f32 %v42_v2, %v46_v6  ;;  %v51_v11 = vsub.f32 %v43_v3, %v47_v7  ;;  %p142_p4 = pnand %p140_p3, %p137_p2 }
  0x2a   :  { %v52_v12 = vmul.f32 %v48_v8, %v48_v8 }
  0x2b   :  { %v53_v13 = vmul.f32 %v49_v9, %v49_v9  ;;  %v54_v14 = vmul.f32 %v50_v10, %v50_v10  ;;  %v55_v15 = vmul.f32 %v51_v11, %v51_v11 }
  0x2d   :  { %v56_v16 = vadd.f32 %v53_v13, %v52_v12 }
  0x2f   :  { %v57_v17 = vadd.f32 %v56_v16, %v54_v14 }
  0x31   :  { %v58_v18 = vadd.f32 %v57_v17, %v55_v15 }
  0x33   :  { %59 = vadd.xlane.f32.xlu0 %v58_v18 }
  0xc0   :  { %v60_v19 = vpop.xlane.xlu0 %59 }
  0xc1   :  { %v61_v20 = vrot.slane %v60_v19, 4 }
  0xc3   :  { %v62_v21 = vadd.f32 %v61_v20, %v60_v19 }
  0xc5   :  { %v63_v22 = vrot.slane %v62_v21, 2 }
  0xc7   :  { %v64_v23 = vadd.f32 %v63_v22, %v62_v21 }
  0xc9   :  { %v65_v24 = vrot.slane %v64_v23, 1 }
  0xcb   :  { %v66_v25 = vadd.f32 %v65_v24, %v64_v23 }
  0xcd   :  { %85 = vpush %v66_v25 }
  0xfe   :  { %s86_s1 = spop %85 }
  0xff   :  { %69 = sst [smem:[#allocation7]] %s86_s1 }
 0x100   :  { %145 = shalt.err (!%p142_p4)
}
 0x101   :  { %s156_s13 = smov [#allocation7]  }
 0x102   :  { %77 = dma.smem_to_hbm %s156_s13, 16, %s210_s2, [#allocation4]  }
 0x103   :  { %150 = dma.done.wait [#allocation4], 16  }
 0x104   :  { %151 = vsyncadd [#allocation4], 4294967280 }
 0x105   :  { %81 = sfence }
 0x106   :  { %82 = vsyncpa [#allocation3], 1 }
 0x107   :  { %83 = vsyncpa [#allocation6], 1 }
 0x108   :  { %84 = vsyncpa [#allocation4], 1 }

</bundles_post_ra>
